<compile_context>
chip_gen: v7x
topology: tpu7x:2x2x1
jax: 0.10.0
libtpu: 0.0.40
codegen_flags: <defaults>
</compile_context>

<pallas_src>
import functools

import jax
import jax.numpy as jnp
from jax import lax
from jax.experimental import pallas as pl
from jax.experimental.pallas import tpu as pltpu


# ----------------------------------------------------------------------------
# in-kernel helpers
# ----------------------------------------------------------------------------
def _layer_norm(x, gamma, beta, eps=1e-5):
    # matches torch.nn.LayerNorm (biased variance, eps inside rsqrt)
    mu = jnp.mean(x, axis=-1, keepdims=True)
    var = jnp.mean((x - mu) ** 2, axis=-1, keepdims=True)
    return (x - mu) * lax.rsqrt(var + eps) * gamma + beta


def _gelu_exact(x):
    # matches torch.nn.GELU() default (erf-based)
    return 0.5 * x * (1.0 + lax.erf(x * 0.7071067811865476))


def _shift_rows(x, n, shift_sign):
    """Return y with y[t] = x[t - n].  Wrapped/padded rows are masked later."""
    if shift_sign == 0:  # fallback: pad + slice (pltpu.roll unavailable)
        rows = x.shape[0]
        pad = jnp.zeros((n, x.shape[1]), x.dtype)
        return jnp.concatenate([pad, x], axis=0)[:rows]
    return pltpu.roll(x, shift=shift_sign * n, axis=0)  # XLU sublane rotate


@functools.lru_cache(maxsize=None)
def _roll_prev_shift():
    """Probe pltpu.roll's direction once (expected jnp.roll semantics:
    out[t] = x[t - shift]).  Returns +1 / -1 for the 'previous row' shift, or
    0 to fall back to the pad+slice path."""
    try:
        def k(x_ref, o_ref):
            o_ref[...] = pltpu.roll(x_ref[...], 1, axis=0)

        x = lax.broadcasted_iota(jnp.float32, (8, 128), 0)
        out = pl.pallas_call(
            k, out_shape=jax.ShapeDtypeStruct((8, 128), jnp.float32))(x)
        out = jax.block_until_ready(out)
        v = float(out[1, 0])
        if v == 0.0:
            return 1
        if v == 2.0:
            return -1
    except Exception:
        pass
    return 0


# ----------------------------------------------------------------------------
# fused transformer-block kernel: grid = (batch_block, layer)
#   - activation (Bb*T rows) lives in the VMEM-resident out block across layers
#   - per-layer weights streamed via the layer grid index
# ----------------------------------------------------------------------------
def fused_blocks_kernel(n_head, seq_len, shift_sign,
                        x_ref, hsum_ref,
                        wqkv_ref, bqkv_ref, wo_ref, bo_ref,
                        ln1_g_ref, ln1_b_ref, ln2_g_ref, ln2_b_ref,
                        wfc_ref, bfc_ref, wpr_ref, bpr_ref,
                        out_ref):
    l = pl.program_id(1)

    @pl.when(l == 0)
    def _load_activation():
        out_ref[...] = x_ref[...].astype(jnp.float32)

    x = out_ref[...]                       # (rows, C) f32, resident across l
    rows, C = x.shape
    hs = C // n_head
    scale = float(hs) ** -0.5

    # ------------------ attention sublayer ------------------
    h = _layer_norm(x, ln1_g_ref[...], ln1_b_ref[...])
    hb = h.astype(jnp.bfloat16)            # bf16 MXU operands, f32 accumulate
    qkv = jnp.dot(hb, wqkv_ref[...],
                  preferred_element_type=jnp.float32) + bqkv_ref[...]
    q = qkv[:, :C] * scale                 # fold 1/sqrt(hs) into q once
    k = qkv[:, C:2 * C]
    v = qkv[:, 2 * C:]

    # banded trigram attention: token t attends only to {t, t-1, t-2}.
    k1 = _shift_rows(k, 1, shift_sign)     # k[t-1]
    k2 = _shift_rows(k, 2, shift_sign)     # k[t-2]
    v1 = _shift_rows(v, 1, shift_sign)
    v2 = _shift_rows(v, 2, shift_sign)

    # per-head score of each diagonal, replicated across that head's lanes,
    # via a bf16 block-diagonal "head-sum" matmul (fast MXU path).
    hsum = hsum_ref[...]                   # (C, C) bf16 0/1, hoisted host-side
    s0 = jnp.dot((q * k).astype(jnp.bfloat16), hsum,
                 preferred_element_type=jnp.float32)
    s1 = jnp.dot((q * k1).astype(jnp.bfloat16), hsum,
                 preferred_element_type=jnp.float32)
    s2 = jnp.dot((q * k2).astype(jnp.bfloat16), hsum,
                 preferred_element_type=jnp.float32)

    # mask rows that see fewer than 3 tokens (also kills wrapped / cross-batch
    # rows introduced by the roll).  rows may hold several batch elements, so
    # the position is taken modulo the sequence length.
    pos = lax.broadcasted_iota(jnp.int32, (rows, 1), 0) % seq_len
    neg = jnp.float32(-1e30)
    s1 = jnp.where(pos >= 1, s1, neg)
    s2 = jnp.where(pos >= 2, s2, neg)

    m = jnp.maximum(s0, jnp.maximum(s1, s2))    # always finite (diag valid)
    e0 = jnp.exp(s0 - m)
    e1 = jnp.exp(s1 - m)
    e2 = jnp.exp(s2 - m)
    inv = pl.reciprocal(e0 + e1 + e2, approx=True)   # EUP, frees VALU slots
    y = (e0 * v + e1 * v1 + e2 * v2) * inv           # == softmax(att) @ V

    y = jnp.dot(y.astype(jnp.bfloat16), wo_ref[...],
                preferred_element_type=jnp.float32) + bo_ref[...]
    x = x + y                                        # dropout = identity

    # ------------------ MLP sublayer ------------------
    h = _layer_norm(x, ln2_g_ref[...], ln2_b_ref[...])
    h = jnp.dot(h.astype(jnp.bfloat16), wfc_ref[...],
                preferred_element_type=jnp.float32) + bfc_ref[...]
    h = _gelu_exact(h)                               # f32 elementwise
    h = jnp.dot(h.astype(jnp.bfloat16), wpr_ref[...],
                preferred_element_type=jnp.float32) + bpr_ref[...]
    out_ref[...] = x + h                             # dropout = identity


def final_head_kernel(x_ref, g_ref, b_ref, w_ref, out_ref):
    """Final LayerNorm + lm_head tile (no bias); output block is lane-dense."""
    x = _layer_norm(x_ref[...].astype(jnp.float32), g_ref[...], b_ref[...])
    out_ref[...] = jnp.dot(x.astype(jnp.bfloat16), w_ref[...],
                           preferred_element_type=jnp.float32
                           ).astype(out_ref.dtype)


# ----------------------------------------------------------------------------
# tiling / budget helpers
# ----------------------------------------------------------------------------
def _pick_batch_block(B, T, max_rows=512):
    """Fold Bb batch elements per grid step (amortize weight DMA, raise MXU M),
    keeping >=2 batch blocks when possible and 8-aligned row blocks."""
    candidates = [bb for bb in range(1, B + 1)
                  if B % bb == 0 and ((bb * T) % 8 == 0 or bb == B)]

    def score(bb):
        return (bb * T <= max_rows, (B // bb >= 2) or B == 1, bb)

    return max(candidates, key=score)


def _blocks_compiler_params():
    kwargs = dict(dimension_semantics=("parallel", "arbitrary"))
    try:
        cap = pltpu.get_tpu_info().vmem_capacity_bytes
        # ~60% of physical VMEM, capped: fits v5e/v6e (128 MiB) and v7x (64 MiB)
        kwargs["vmem_limit_bytes"] = int(min(cap * 0.6, 96 * 2 ** 20))
    except Exception:
        pass  # fall back to the compiler's default scoped-VMEM limit
    return pltpu.CompilerParams(**kwargs)


# ----------------------------------------------------------------------------
# pallas_call wrappers
# ----------------------------------------------------------------------------
def run_blocks(x, p, n_head):
    """All transformer blocks in one pallas_call: grid = (B//Bb, n_layer)."""
    B, T, C = x.shape
    F = 4 * C
    n_layer = p['wqkv'].shape[0]
    N = B * T

    Bb = _pick_batch_block(B, T)
    rows = Bb * T
    shift_sign = _roll_prev_shift()

    x2 = x.reshape(N, C)

    act_idx = lambda b, l: (b, 0)        # activation block depends on b only
    lay_idx = lambda b, l: (l, 0, 0)     # weights depend on the layer index
    const_idx = lambda b, l: (0, 0)      # head-sum matrix: resident constant

    def wspec(shape):
        return pl.BlockSpec((None,) + shape, lay_idx)

    in_specs = [
        pl.BlockSpec((rows, C), act_idx),          # activation rows
        pl.BlockSpec((C, C), const_idx),           # head_sum (bf16 constant)
        wspec((C, 3 * C)), wspec((1, 3 * C)),      # wqkv, bqkv (fused)
        wspec((C, C)), wspec((1, C)),              # wo, bo
        wspec((1, C)), wspec((1, C)),              # ln1 gamma, beta
        wspec((1, C)), wspec((1, C)),              # ln2 gamma, beta
        wspec((C, F)), wspec((1, F)),              # wfc, bfc
        wspec((F, C)), wspec((1, C)),              # wpr, bpr
    ]

    out = pl.pallas_call(
        functools.partial(fused_blocks_kernel, n_head, T, shift_sign),
        out_shape=jax.ShapeDtypeStruct((N, C), jnp.float32),
        grid=(B // Bb, n_layer),
        in_specs=in_specs,
        out_specs=pl.BlockSpec((rows, C), act_idx),
        compiler_params=_blocks_compiler_params(),
    )(x2, p['head_sum'], p['wqkv'], p['bqkv'], p['wo'], p['bo'],
      p['ln1_g'], p['ln1_b'], p['ln2_g'], p['ln2_b'],
      p['wfc'], p['bfc'], p['wpr'], p['bpr'])
    return out.reshape(B, T, C)


def run_final_head(x, gamma, beta, w_head_padded):
    """Row- and vocab-tiled LN_f + lm_head; lane-dense output tiles."""
    B, T, C = x.shape
    N = B * T
    Vp = w_head_padded.shape[1]

    # M tile: target 256 rows for the MXU; pad N up instead of shrinking TM.
    TM = 256 if N >= 256 else max(8, ((N + 7) // 8) * 8)
    Np = pl.cdiv(N, TM) * TM
    # vocab tile: stream (C, TN) weight tiles instead of whole-vocab residency.
    TN = 512 if Vp >= 512 else Vp
    while Vp % TN:
        TN //= 2

    x2 = x.reshape(N, C)
    if Np != N:
        x2 = jnp.pad(x2, ((0, Np - N), (0, 0)))

    out = pl.pallas_call(
        final_head_kernel,
        out_shape=jax.ShapeDtypeStruct((Np, Vp), jnp.float32),
        grid=(Np // TM, Vp // TN),
        in_specs=[pl.BlockSpec((TM, C), lambda i, j: (i, 0)),
                  pl.BlockSpec((1, C), lambda i, j: (0, 0)),
                  pl.BlockSpec((1, C), lambda i, j: (0, 0)),
                  pl.BlockSpec((C, TN), lambda i, j: (0, j))],
        out_specs=pl.BlockSpec((TM, TN), lambda i, j: (i, j)),
        compiler_params=pltpu.CompilerParams(
            dimension_semantics=("parallel", "parallel")),
    )(x2, gamma, beta, w_head_padded)
    return out[:N].reshape(B, T, Vp)


# ----------------------------------------------------------------------------
# parameter init (mirrors TrigramGPT._init_weights; weights stacked over
# layers and fused for QKV, matmul weights bf16, biases / LN / embeddings f32)
# ----------------------------------------------------------------------------
def init_params(key, vocab_size, n_embd, n_head, n_layer, max_seq_len):
    C = n_embd
    F = 4 * C
    V = vocab_size
    Vp = ((V + 127) // 128) * 128
    keys = iter(jax.random.split(key, 4 * n_layer + 2))

    def nrm(shape):
        return 0.02 * jax.random.normal(next(keys), shape, dtype=jnp.float32)

    def stack_nrm(shape):
        return jnp.stack([nrm(shape) for _ in range(n_layer)], 0).astype(jnp.bfloat16)

    p = {}
    p['tok_emb'] = nrm((V, C))
    p['pos_emb'] = jnp.zeros((1, max_seq_len, C), jnp.float32)
    p['wqkv'] = stack_nrm((C, 3 * C))
    p['bqkv'] = jnp.zeros((n_layer, 1, 3 * C), jnp.float32)
    p['wo'] = stack_nrm((C, C)); p['bo'] = jnp.zeros((n_layer, 1, C), jnp.float32)
    p['ln1_g'] = jnp.ones((n_layer, 1, C), jnp.float32)
    p['ln1_b'] = jnp.zeros((n_layer, 1, C), jnp.float32)
    p['ln2_g'] = jnp.ones((n_layer, 1, C), jnp.float32)
    p['ln2_b'] = jnp.zeros((n_layer, 1, C), jnp.float32)
    p['wfc'] = stack_nrm((C, F)); p['bfc'] = jnp.zeros((n_layer, 1, F), jnp.float32)
    p['wpr'] = stack_nrm((F, C)); p['bpr'] = jnp.zeros((n_layer, 1, C), jnp.float32)
    p['ln_f_g'] = jnp.ones((1, C), jnp.float32)
    p['ln_f_b'] = jnp.zeros((1, C), jnp.float32)
    lm = nrm((C, V))                                   # (in, out), no bias
    p['lm_head_w'] = jnp.pad(lm, ((0, 0), (0, Vp - V))).astype(jnp.bfloat16)
    # constant block-diagonal "sum within each head" matrix, hoisted host-side
    hid = jnp.arange(C) // (C // n_head)
    p['head_sum'] = (hid[:, None] == hid[None, :]).astype(jnp.bfloat16)
    return p


# ----------------------------------------------------------------------------
# full forward pass (embedding gather is plain-JAX glue)
# ----------------------------------------------------------------------------
def trigram_gpt_forward(params, idx, n_head, vocab_size):
    B, T = idx.shape
    tok = params['tok_emb'][idx]                 # (B, T, C) embedding lookup
    pos = params['pos_emb'][:, :T, :]            # (1, T, C)
    x = tok + pos                                # dropout = identity (eval)
    x = run_blocks(x, params, n_head)
    logits_p = run_final_head(x, params['ln_f_g'], params['ln_f_b'],
                              params['lm_head_w'])
    # NOTE: downstream softmax/CE can consume the 128-padded logits directly
    # (padding columns come from zero weight columns); we slice only to match
    # the PyTorch module's return shape.
    # TODO(synk): cross-entropy loss path (targets != None) and the host-side
    # autoregressive generate() sampling loop are not part of the kernel.
    return logits_p[:, :, :vocab_size]


# ----------------------------------------------------------------------------
# pure-JAX reference (full T x T masked softmax, f32) for a sanity check
# ----------------------------------------------------------------------------
def reference_forward(p, idx, n_head, vocab_size):
    def ln(x, g, b, eps=1e-5):
        mu = jnp.mean(x, -1, keepdims=True)
        var = jnp.mean((x - mu) ** 2, -1, keepdims=True)
        return (x - mu) / jnp.sqrt(var + eps) * g + b

    x = p['tok_emb'][idx] + p['pos_emb'][:, :idx.shape[1], :]
    B, T, C = x.shape
    hs = C // n_head
    L = p['wqkv'].shape[0]
    rows = jnp.arange(T)[:, None]
    cols = jnp.arange(T)[None, :]
    allowed = (cols <= rows) & ((rows - cols) <= 2)
    for l in range(L):
        g = lambda n: p[n][l].astype(jnp.float32)
        h = ln(x, g('ln1_g'), g('ln1_b'))
        wqkv, bqkv = g('wqkv'), g('bqkv')
        q = h @ wqkv[:, :C] + bqkv[:, :C]
        k = h @ wqkv[:, C:2 * C] + bqkv[:, C:2 * C]
        v = h @ wqkv[:, 2 * C:] + bqkv[:, 2 * C:]
        q = q.reshape(B, T, n_head, hs).transpose(0, 2, 1, 3)
        k = k.reshape(B, T, n_head, hs).transpose(0, 2, 1, 3)
        v = v.reshape(B, T, n_head, hs).transpose(0, 2, 1, 3)
        att = (q @ jnp.swapaxes(k, -1, -2)) / jnp.sqrt(float(hs))
        att = jnp.where(allowed[None, None], att, -jnp.inf)
        att = jax.nn.softmax(att, axis=-1)
        y = (att @ v).transpose(0, 2, 1, 3).reshape(B, T, C)
        x = x + (y @ g('wo') + g('bo'))
        h = ln(x, g('ln2_g'), g('ln2_b'))
        h = h @ g('wfc') + g('bfc')
        h = 0.5 * h * (1.0 + lax.erf(h * 0.7071067811865476))
        x = x + (h @ g('wpr') + g('bpr'))
    x = ln(x, p['ln_f_g'], p['ln_f_b'])
    w = p['lm_head_w'].astype(jnp.float32)[:, :vocab_size]
    return x @ w


# ----------------------------------------------------------------------------
if __name__ == "__main__":
    vocab_size = 64
    n_embd = 32
    n_head = 4
    n_layer = 2
    max_seq_len = 16
    B, T = 2, 8

    key = jax.random.PRNGKey(0)
    pkey, dkey = jax.random.split(key)
    params = init_params(pkey, vocab_size, n_embd, n_head, n_layer, max_seq_len)
    idx = jax.random.randint(dkey, (B, T), 0, vocab_size, dtype=jnp.int32)

    logits = trigram_gpt_forward(params, idx, n_head, vocab_size)
    logits = jax.block_until_ready(logits)

    assert logits.shape == (B, T, vocab_size), logits.shape
    assert bool(jnp.all(jnp.isfinite(logits)))

    ref = reference_forward(params, idx, n_head, vocab_size)
    max_err = float(jnp.max(jnp.abs(logits - ref)))
    # bf16 matmul operands + bf16 head-sum scores + approx reciprocal softmax
    assert max_err < 3e-2, f"mismatch vs reference: {max_err}"

    print("KERNEL_OK")
</pallas_src>

<mosaic_0001>
module attributes {stable_mosaic.version = 11 : i64} {
  func.func @k(%arg0: memref<8x128xf32, #tpu.memory_space<vmem>>, %arg1: memref<8x128xf32, #tpu.memory_space<vmem>>) attributes {dimension_semantics = [], scalar_prefetch = 0 : i64, scratch_operands = 0 : i64, tpu.core_type = #tpu.core_type<tc>} {
    %c0 = arith.constant 0 : index
    %c0_0 = arith.constant 0 : index
    %0 = vector.load %arg0[%c0, %c0_0] : memref<8x128xf32, #tpu.memory_space<vmem>>, vector<8x128xf32>
    %c1_i32 = arith.constant 1 : i32
    %1 = tpu.dynamic_rotate %0 by %c1_i32 dim 0 : vector<8x128xf32>, i32 -> vector<8x128xf32>
    %c0_1 = arith.constant 0 : index
    %c0_2 = arith.constant 0 : index
    %2 = vector.load %arg1[%c0_1, %c0_2] : memref<8x128xf32, #tpu.memory_space<vmem>>, vector<8x128xf32>
    tpu.vector_store %arg1[%c0_1, %c0_2], %1 {strides = array<i32>} : memref<8x128xf32, #tpu.memory_space<vmem>>, vector<8x128xf32>,
    return
  }
}

module attributes {stable_mosaic.version = 11 : i64} {
  func.func @fused_blocks_kernel(%arg0: i32, %arg1: i32, %arg2: memref<8x32xf32, #tpu.memory_space<vmem>>, %arg3: memref<32x32xbf16, #tpu.memory_space<vmem>>, %arg4: memref<1x32x96xbf16, #tpu.memory_space<vmem>>, %arg5: memref<1x1x96xf32, #tpu.memory_space<vmem>>, %arg6: memref<1x32x32xbf16, #tpu.memory_space<vmem>>, %arg7: memref<1x1x32xf32, #tpu.memory_space<vmem>>, %arg8: memref<1x1x32xf32, #tpu.memory_space<vmem>>, %arg9: memref<1x1x32xf32, #tpu.memory_space<vmem>>, %arg10: memref<1x1x32xf32, #tpu.memory_space<vmem>>, %arg11: memref<1x1x32xf32, #tpu.memory_space<vmem>>, %arg12: memref<1x32x128xbf16, #tpu.memory_space<vmem>>, %arg13: memref<1x1x128xf32, #tpu.memory_space<vmem>>, %arg14: memref<1x128x32xbf16, #tpu.memory_space<vmem>>, %arg15: memref<1x1x32xf32, #tpu.memory_space<vmem>>, %arg16: memref<8x32xf32, #tpu.memory_space<vmem>>) attributes {dimension_semantics = [#tpu.dimension_semantics<parallel>, #tpu.dimension_semantics<arbitrary>], iteration_bounds = array<i64: 2, 2>, scalar_prefetch = 0 : i64, scratch_operands = 0 : i64, tpu.core_type = #tpu.core_type<tc>, window_params = [{transform_indices = @transform_0, window_bounds = array<i64: 8, 32>}, {pipeline_mode = #tpu.pipeline_mode<synchronous>, transform_indices = @transform_1, window_bounds = array<i64: 32, 32>}, {transform_indices = @transform_2, window_bounds = array<i64: 1, 32, 96>}, {transform_indices = @transform_3, window_bounds = array<i64: 1, 1, 96>}, {transform_indices = @transform_4, window_bounds = array<i64: 1, 32, 32>}, {transform_indices = @transform_5, window_bounds = array<i64: 1, 1, 32>}, {transform_indices = @transform_6, window_bounds = array<i64: 1, 1, 32>}, {transform_indices = @transform_7, window_bounds = array<i64: 1, 1, 32>}, {transform_indices = @transform_8, window_bounds = array<i64: 1, 1, 32>}, {transform_indices = @transform_9, window_bounds = array<i64: 1, 1, 32>}, {transform_indices = @transform_10, window_bounds = array<i64: 1, 32, 128>}, {transform_indices = @transform_11, window_bounds = array<i64: 1, 1, 128>}, {transform_indices = @transform_12, window_bounds = array<i64: 1, 128, 32>}, {transform_indices = @transform_13, window_bounds = array<i64: 1, 1, 32>}, {transform_indices = @transform_14, window_bounds = array<i64: 8, 32>}]} {
    %c0_i32 = arith.constant 0 : i32
    %0 = arith.cmpi eq, %arg1, %c0_i32 : i32
    %1 = arith.extui %0 : i1 to i32
    %c0_i32_0 = arith.constant 0 : i32
    %2 = arith.cmpi ne, %1, %c0_i32_0 : i32
    scf.if %2 {
      %c0_73 = arith.constant 0 : index
      %c0_74 = arith.constant 0 : index
      %172 = vector.load %arg2[%c0_73, %c0_74] : memref<8x32xf32, #tpu.memory_space<vmem>>, vector<8x32xf32>
      %c0_75 = arith.constant 0 : index
      %c0_76 = arith.constant 0 : index
      %173 = vector.load %arg16[%c0_75, %c0_76] : memref<8x32xf32, #tpu.memory_space<vmem>>, vector<8x32xf32>
      tpu.vector_store %arg16[%c0_75, %c0_76], %172 {strides = array<i32>} : memref<8x32xf32, #tpu.memory_space<vmem>>, vector<8x32xf32>,
    } else {
    }
    %c0 = arith.constant 0 : index
    %c0_1 = arith.constant 0 : index
    %3 = vector.load %arg16[%c0, %c0_1] : memref<8x32xf32, #tpu.memory_space<vmem>>, vector<8x32xf32>
    %c0_2 = arith.constant 0 : index
    %c0_3 = arith.constant 0 : index
    %c0_4 = arith.constant 0 : index
    %4 = vector.load %arg8[%c0_2, %c0_3, %c0_4] : memref<1x1x32xf32, #tpu.memory_space<vmem>>, vector<1x1x32xf32>
    %5 = vector.shape_cast %4 : vector<1x1x32xf32> to vector<1x32xf32>
    %c0_5 = arith.constant 0 : index
    %c0_6 = arith.constant 0 : index
    %c0_7 = arith.constant 0 : index
    %6 = vector.load %arg9[%c0_5, %c0_6, %c0_7] : memref<1x1x32xf32, #tpu.memory_space<vmem>>, vector<1x1x32xf32>
    %7 = vector.shape_cast %6 : vector<1x1x32xf32> to vector<1x32xf32>
    %cst = arith.constant dense<0.000000e+00> : vector<8xf32>
    %8 = vector.multi_reduction <add>, %3, %cst [1] : vector<8x32xf32> to vector<8xf32>
    %9 = vector.shape_cast %8 : vector<8xf32> to vector<8x1xf32>
    %cst_8 = arith.constant 3.200000e+01 : f32
    %10 = vector.broadcast %cst_8 : f32 to vector<8x1xf32>
    %11 = arith.divf %9, %10 : vector<8x1xf32>
    %12 = vector.broadcast %11 : vector<8x1xf32> to vector<8x32xf32>
    %13 = arith.subf %3, %12 : vector<8x32xf32>
    %14 = arith.mulf %13, %13 : vector<8x32xf32>
    %cst_9 = arith.constant dense<0.000000e+00> : vector<8xf32>
    %15 = vector.multi_reduction <add>, %14, %cst_9 [1] : vector<8x32xf32> to vector<8xf32>
    %16 = vector.shape_cast %15 : vector<8xf32> to vector<8x1xf32>
    %cst_10 = arith.constant 3.200000e+01 : f32
    %17 = vector.broadcast %cst_10 : f32 to vector<8x1xf32>
    %18 = arith.divf %16, %17 : vector<8x1xf32>
    %19 = vector.broadcast %11 : vector<8x1xf32> to vector<8x32xf32>
    %20 = arith.subf %3, %19 : vector<8x32xf32>
    %cst_11 = arith.constant 9.99999974E-6 : f32
    %21 = vector.broadcast %cst_11 : f32 to vector<8x1xf32>
    %22 = arith.addf %18, %21 : vector<8x1xf32>
    %23 = math.rsqrt %22 : vector<8x1xf32>
    %24 = vector.broadcast %23 : vector<8x1xf32> to vector<8x32xf32>
    %25 = arith.mulf %20, %24 : vector<8x32xf32>
    %26 = vector.broadcast %5 : vector<1x32xf32> to vector<8x32xf32>
    %27 = arith.mulf %25, %26 : vector<8x32xf32>
    %28 = vector.broadcast %7 : vector<1x32xf32> to vector<8x32xf32>
    %29 = arith.addf %27, %28 : vector<8x32xf32>
    %30 = arith.truncf %29 : vector<8x32xf32> to vector<8x32xbf16>
    %c0_12 = arith.constant 0 : index
    %c0_13 = arith.constant 0 : index
    %c0_14 = arith.constant 0 : index
    %31 = vector.load %arg4[%c0_12, %c0_13, %c0_14] : memref<1x32x96xbf16, #tpu.memory_space<vmem>>, vector<1x32x96xbf16>
    %32 = vector.shape_cast %31 : vector<1x32x96xbf16> to vector<32x96xbf16>
    %cst_15 = arith.constant dense<0.000000e+00> : vector<8x96xf32>
    %33 = tpu.matmul %30, %32, %cst_15 {dimension_numbers = #tpu.dot_dimension_numbers<[1], [0], [0], [1], [0, 0, 1, 1], [], []>} : vector<8x32xbf16>, vector<32x96xbf16>, vector<8x96xf32> -> vector<8x96xf32>
    %c0_16 = arith.constant 0 : index
    %c0_17 = arith.constant 0 : index
    %c0_18 = arith.constant 0 : index
    %34 = vector.load %arg5[%c0_16, %c0_17, %c0_18] : memref<1x1x96xf32, #tpu.memory_space<vmem>>, vector<1x1x96xf32>
    %35 = vector.shape_cast %34 : vector<1x1x96xf32> to vector<1x96xf32>
    %36 = vector.broadcast %35 : vector<1x96xf32> to vector<8x96xf32>
    %37 = arith.addf %33, %36 : vector<8x96xf32>
    %38 = vector.extract_strided_slice %37 {offsets = [0, 0], sizes = [8, 32], strides = [1, 1]} : vector<8x96xf32> to vector<8x32xf32>
    %cst_19 = arith.constant 0.353553385 : f32
    %39 = vector.broadcast %cst_19 : f32 to vector<8x32xf32>
    %40 = arith.mulf %38, %39 : vector<8x32xf32>
    %41 = vector.extract_strided_slice %37 {offsets = [0, 32], sizes = [8, 32], strides = [1, 1]} : vector<8x96xf32> to vector<8x32xf32>
    %42 = vector.extract_strided_slice %37 {offsets = [0, 64], sizes = [8, 32], strides = [1, 1]} : vector<8x96xf32> to vector<8x32xf32>
    %cst_20 = arith.constant 0.000000e+00 : f32
    %43 = vector.broadcast %cst_20 : f32 to vector<1x32xf32>
    %44 = tpu.concatenate %43, %41 in 0 : vector<1x32xf32>, vector<8x32xf32> -> vector<9x32xf32>
    %45 = vector.extract_strided_slice %44 {offsets = [0, 0], sizes = [8, 32], strides = [1, 1]} : vector<9x32xf32> to vector<8x32xf32>
    %cst_21 = arith.constant 0.000000e+00 : f32
    %46 = vector.broadcast %cst_21 : f32 to vector<2x32xf32>
    %47 = tpu.concatenate %46, %41 in 0 : vector<2x32xf32>, vector<8x32xf32> -> vector<10x32xf32>
    %48 = vector.extract_strided_slice %47 {offsets = [0, 0], sizes = [8, 32], strides = [1, 1]} : vector<10x32xf32> to vector<8x32xf32>
    %cst_22 = arith.constant 0.000000e+00 : f32
    %49 = vector.broadcast %cst_22 : f32 to vector<1x32xf32>
    %50 = tpu.concatenate %49, %42 in 0 : vector<1x32xf32>, vector<8x32xf32> -> vector<9x32xf32>
    %51 = vector.extract_strided_slice %50 {offsets = [0, 0], sizes = [8, 32], strides = [1, 1]} : vector<9x32xf32> to vector<8x32xf32>
    %cst_23 = arith.constant 0.000000e+00 : f32
    %52 = vector.broadcast %cst_23 : f32 to vector<2x32xf32>
    %53 = tpu.concatenate %52, %42 in 0 : vector<2x32xf32>, vector<8x32xf32> -> vector<10x32xf32>
    %54 = vector.extract_strided_slice %53 {offsets = [0, 0], sizes = [8, 32], strides = [1, 1]} : vector<10x32xf32> to vector<8x32xf32>
    %c0_24 = arith.constant 0 : index
    %c0_25 = arith.constant 0 : index
    %55 = vector.load %arg3[%c0_24, %c0_25] : memref<32x32xbf16, #tpu.memory_space<vmem>>, vector<32x32xbf16>
    %56 = arith.mulf %40, %41 : vector<8x32xf32>
    %57 = arith.truncf %56 : vector<8x32xf32> to vector<8x32xbf16>
    %cst_26 = arith.constant dense<0.000000e+00> : vector<8x32xf32>
    %58 = tpu.matmul %57, %55, %cst_26 {dimension_numbers = #tpu.dot_dimension_numbers<[1], [0], [0], [1], [0, 0, 1, 1], [], []>} : vector<8x32xbf16>, vector<32x32xbf16>, vector<8x32xf32> -> vector<8x32xf32>
    %59 = arith.mulf %40, %45 : vector<8x32xf32>
    %60 = arith.truncf %59 : vector<8x32xf32> to vector<8x32xbf16>
    %cst_27 = arith.constant dense<0.000000e+00> : vector<8x32xf32>
    %61 = tpu.matmul %60, %55, %cst_27 {dimension_numbers = #tpu.dot_dimension_numbers<[1], [0], [0], [1], [0, 0, 1, 1], [], []>} : vector<8x32xbf16>, vector<32x32xbf16>, vector<8x32xf32> -> vector<8x32xf32>
    %62 = arith.mulf %40, %48 : vector<8x32xf32>
    %63 = arith.truncf %62 : vector<8x32xf32> to vector<8x32xbf16>
    %cst_28 = arith.constant dense<0.000000e+00> : vector<8x32xf32>
    %64 = tpu.matmul %63, %55, %cst_28 {dimension_numbers = #tpu.dot_dimension_numbers<[1], [0], [0], [1], [0, 0, 1, 1], [], []>} : vector<8x32xbf16>, vector<32x32xbf16>, vector<8x32xf32> -> vector<8x32xf32>
    %65 = tpu.iota {dimensions = array<i32: 0>} : vector<8x1xi32>
    %c8_i32 = arith.constant 8 : i32
    %c0_i32_29 = arith.constant 0 : i32
    %66 = arith.cmpi eq, %c8_i32, %c0_i32_29 : i32
    %c1_i32 = arith.constant 1 : i32
    %67 = arith.select %66, %c1_i32, %c8_i32 : i32
    %68 = vector.broadcast %67 : i32 to vector<8x1xi32>
    %69 = arith.remsi %65, %68 : vector<8x1xi32>
    %c0_i32_30 = arith.constant 0 : i32
    %70 = vector.broadcast %c0_i32_30 : i32 to vector<8x1xi32>
    %71 = arith.cmpi ne, %69, %70 : vector<8x1xi32>
    %c0_i32_31 = arith.constant 0 : i32
    %72 = vector.broadcast %c0_i32_31 : i32 to vector<8x1xi32>
    %73 = arith.cmpi slt, %69, %72 : vector<8x1xi32>
    %c0_i32_32 = arith.constant 0 : i32
    %74 = arith.cmpi slt, %67, %c0_i32_32 : i32
    %75 = vector.broadcast %74 : i1 to vector<8x1xi1>
    %76 = vector.broadcast %75 : vector<8x1xi1> to vector<8x1xi1>
    %77 = arith.xori %73, %76 : vector<8x1xi1>
    %78 = arith.andi %77, %71 : vector<8x1xi1>
    %79 = vector.broadcast %67 : i32 to vector<8x1xi32>
    %80 = arith.addi %69, %79 : vector<8x1xi32>
    %81 = arith.select %78, %80, %69 : vector<8x1xi1>, vector<8x1xi32>
    %c1_i32_33 = arith.constant 1 : i32
    %82 = vector.broadcast %c1_i32_33 : i32 to vector<8x1xi32>
    %83 = arith.cmpi sge, %81, %82 : vector<8x1xi32>
    %cst_34 = arith.constant -1.000000e+30 : f32
    %84 = vector.shape_cast %83 : vector<8x1xi1> to vector<8x1xi1>
    %85 = vector.broadcast %84 : vector<8x1xi1> to vector<8x32xi1>
    %86 = vector.broadcast %cst_34 : f32 to vector<8x32xf32>
    %87 = arith.select %85, %61, %86 : vector<8x32xi1>, vector<8x32xf32>
    %c2_i32 = arith.constant 2 : i32
    %88 = vector.broadcast %c2_i32 : i32 to vector<8x1xi32>
    %89 = arith.cmpi sge, %81, %88 : vector<8x1xi32>
    %cst_35 = arith.constant -1.000000e+30 : f32
    %90 = vector.shape_cast %89 : vector<8x1xi1> to vector<8x1xi1>
    %91 = vector.broadcast %90 : vector<8x1xi1> to vector<8x32xi1>
    %92 = vector.broadcast %cst_35 : f32 to vector<8x32xf32>
    %93 = arith.select %91, %64, %92 : vector<8x32xi1>, vector<8x32xf32>
    %94 = arith.maximumf %87, %93 : vector<8x32xf32>
    %95 = arith.maximumf %58, %94 : vector<8x32xf32>
    %96 = arith.subf %58, %95 : vector<8x32xf32>
    %97 = math.exp %96 : vector<8x32xf32>
    %98 = arith.subf %87, %95 : vector<8x32xf32>
    %99 = math.exp %98 : vector<8x32xf32>
    %100 = arith.subf %93, %95 : vector<8x32xf32>
    %101 = math.exp %100 : vector<8x32xf32>
    %102 = arith.addf %97, %99 : vector<8x32xf32>
    %103 = arith.addf %102, %101 : vector<8x32xf32>
    %104 = tpu.reciprocal %103 {approx = true} : vector<8x32xf32> -> vector<8x32xf32>
    %105 = arith.mulf %97, %42 : vector<8x32xf32>
    %106 = arith.mulf %99, %51 : vector<8x32xf32>
    %107 = arith.addf %105, %106 : vector<8x32xf32>
    %108 = arith.mulf %101, %54 : vector<8x32xf32>
    %109 = arith.addf %107, %108 : vector<8x32xf32>
    %110 = arith.mulf %109, %104 : vector<8x32xf32>
    %111 = arith.truncf %110 : vector<8x32xf32> to vector<8x32xbf16>
    %c0_36 = arith.constant 0 : index
    %c0_37 = arith.constant 0 : index
    %c0_38 = arith.constant 0 : index
    %112 = vector.load %arg6[%c0_36, %c0_37, %c0_38] : memref<1x32x32xbf16, #tpu.memory_space<vmem>>, vector<1x32x32xbf16>
    %113 = vector.shape_cast %112 : vector<1x32x32xbf16> to vector<32x32xbf16>
    %cst_39 = arith.constant dense<0.000000e+00> : vector<8x32xf32>
    %114 = tpu.matmul %111, %113, %cst_39 {dimension_numbers = #tpu.dot_dimension_numbers<[1], [0], [0], [1], [0, 0, 1, 1], [], []>} : vector<8x32xbf16>, vector<32x32xbf16>, vector<8x32xf32> -> vector<8x32xf32>
    %c0_40 = arith.constant 0 : index
    %c0_41 = arith.constant 0 : index
    %c0_42 = arith.constant 0 : index
    %115 = vector.load %arg7[%c0_40, %c0_41, %c0_42] : memref<1x1x32xf32, #tpu.memory_space<vmem>>, vector<1x1x32xf32>
    %116 = vector.shape_cast %115 : vector<1x1x32xf32> to vector<1x32xf32>
    %117 = vector.broadcast %116 : vector<1x32xf32> to vector<8x32xf32>
    %118 = arith.addf %114, %117 : vector<8x32xf32>
    %119 = arith.addf %3, %118 : vector<8x32xf32>
    %c0_43 = arith.constant 0 : index
    %c0_44 = arith.constant 0 : index
    %c0_45 = arith.constant 0 : index
    %120 = vector.load %arg10[%c0_43, %c0_44, %c0_45] : memref<1x1x32xf32, #tpu.memory_space<vmem>>, vector<1x1x32xf32>
    %121 = vector.shape_cast %120 : vector<1x1x32xf32> to vector<1x32xf32>
    %c0_46 = arith.constant 0 : index
    %c0_47 = arith.constant 0 : index
    %c0_48 = arith.constant 0 : index
    %122 = vector.load %arg11[%c0_46, %c0_47, %c0_48] : memref<1x1x32xf32, #tpu.memory_space<vmem>>, vector<1x1x32xf32>
    %123 = vector.shape_cast %122 : vector<1x1x32xf32> to vector<1x32xf32>
    %cst_49 = arith.constant dense<0.000000e+00> : vector<8xf32>
    %124 = vector.multi_reduction <add>, %119, %cst_49 [1] : vector<8x32xf32> to vector<8xf32>
    %125 = vector.shape_cast %124 : vector<8xf32> to vector<8x1xf32>
    %cst_50 = arith.constant 3.200000e+01 : f32
    %126 = vector.broadcast %cst_50 : f32 to vector<8x1xf32>
    %127 = arith.divf %125, %126 : vector<8x1xf32>
    %128 = vector.broadcast %127 : vector<8x1xf32> to vector<8x32xf32>
    %129 = arith.subf %119, %128 : vector<8x32xf32>
    %130 = arith.mulf %129, %129 : vector<8x32xf32>
    %cst_51 = arith.constant dense<0.000000e+00> : vector<8xf32>
    %131 = vector.multi_reduction <add>, %130, %cst_51 [1] : vector<8x32xf32> to vector<8xf32>
    %132 = vector.shape_cast %131 : vector<8xf32> to vector<8x1xf32>
    %cst_52 = arith.constant 3.200000e+01 : f32
    %133 = vector.broadcast %cst_52 : f32 to vector<8x1xf32>
    %134 = arith.divf %132, %133 : vector<8x1xf32>
    %135 = vector.broadcast %127 : vector<8x1xf32> to vector<8x32xf32>
    %136 = arith.subf %119, %135 : vector<8x32xf32>
    %cst_53 = arith.constant 9.99999974E-6 : f32
    %137 = vector.broadcast %cst_53 : f32 to vector<8x1xf32>
    %138 = arith.addf %134, %137 : vector<8x1xf32>
    %139 = math.rsqrt %138 : vector<8x1xf32>
    %140 = vector.broadcast %139 : vector<8x1xf32> to vector<8x32xf32>
    %141 = arith.mulf %136, %140 : vector<8x32xf32>
    %142 = vector.broadcast %121 : vector<1x32xf32> to vector<8x32xf32>
    %143 = arith.mulf %141, %142 : vector<8x32xf32>
    %144 = vector.broadcast %123 : vector<1x32xf32> to vector<8x32xf32>
    %145 = arith.addf %143, %144 : vector<8x32xf32>
    %146 = arith.truncf %145 : vector<8x32xf32> to vector<8x32xbf16>
    %c0_54 = arith.constant 0 : index
    %c0_55 = arith.constant 0 : index
    %c0_56 = arith.constant 0 : index
    %147 = vector.load %arg12[%c0_54, %c0_55, %c0_56] : memref<1x32x128xbf16, #tpu.memory_space<vmem>>, vector<1x32x128xbf16>
    %148 = vector.shape_cast %147 : vector<1x32x128xbf16> to vector<32x128xbf16>
    %cst_57 = arith.constant dense<0.000000e+00> : vector<8x128xf32>
    %149 = tpu.matmul %146, %148, %cst_57 {dimension_numbers = #tpu.dot_dimension_numbers<[1], [0], [0], [1], [0, 0, 1, 1], [], []>} : vector<8x32xbf16>, vector<32x128xbf16>, vector<8x128xf32> -> vector<8x128xf32>
    %c0_58 = arith.constant 0 : index
    %c0_59 = arith.constant 0 : index
    %c0_60 = arith.constant 0 : index
    %150 = vector.load %arg13[%c0_58, %c0_59, %c0_60] : memref<1x1x128xf32, #tpu.memory_space<vmem>>, vector<1x1x128xf32>
    %151 = vector.shape_cast %150 : vector<1x1x128xf32> to vector<1x128xf32>
    %152 = vector.broadcast %151 : vector<1x128xf32> to vector<8x128xf32>
    %153 = arith.addf %149, %152 : vector<8x128xf32>
    %cst_61 = arith.constant 5.000000e-01 : f32
    %154 = vector.broadcast %cst_61 : f32 to vector<8x128xf32>
    %155 = arith.mulf %154, %153 : vector<8x128xf32>
    %cst_62 = arith.constant 0.707106769 : f32
    %156 = vector.broadcast %cst_62 : f32 to vector<8x128xf32>
    %157 = arith.mulf %153, %156 : vector<8x128xf32>
    %158 = math.erf %157 : vector<8x128xf32>
    %cst_63 = arith.constant 1.000000e+00 : f32
    %159 = vector.broadcast %cst_63 : f32 to vector<8x128xf32>
    %160 = arith.addf %159, %158 : vector<8x128xf32>
    %161 = arith.mulf %155, %160 : vector<8x128xf32>
    %162 = arith.truncf %161 : vector<8x128xf32> to vector<8x128xbf16>
    %c0_64 = arith.constant 0 : index
    %c0_65 = arith.constant 0 : index
    %c0_66 = arith.constant 0 : index
    %163 = vector.load %arg14[%c0_64, %c0_65, %c0_66] : memref<1x128x32xbf16, #tpu.memory_space<vmem>>, vector<1x128x32xbf16>
    %164 = vector.shape_cast %163 : vector<1x128x32xbf16> to vector<128x32xbf16>
    %cst_67 = arith.constant dense<0.000000e+00> : vector<8x32xf32>
    %165 = tpu.matmul %162, %164, %cst_67 {dimension_numbers = #tpu.dot_dimension_numbers<[1], [0], [0], [1], [0, 0, 1, 1], [], []>} : vector<8x128xbf16>, vector<128x32xbf16>, vector<8x32xf32> -> vector<8x32xf32>
    %c0_68 = arith.constant 0 : index
    %c0_69 = arith.constant 0 : index
    %c0_70 = arith.constant 0 : index
    %166 = vector.load %arg15[%c0_68, %c0_69, %c0_70] : memref<1x1x32xf32, #tpu.memory_space<vmem>>, vector<1x1x32xf32>
    %167 = vector.shape_cast %166 : vector<1x1x32xf32> to vector<1x32xf32>
    %168 = vector.broadcast %167 : vector<1x32xf32> to vector<8x32xf32>
    %169 = arith.addf %165, %168 : vector<8x32xf32>
    %170 = arith.addf %119, %169 : vector<8x32xf32>
    %c0_71 = arith.constant 0 : index
    %c0_72 = arith.constant 0 : index
    %171 = vector.load %arg16[%c0_71, %c0_72] : memref<8x32xf32, #tpu.memory_space<vmem>>, vector<8x32xf32>
    tpu.vector_store %arg16[%c0_71, %c0_72], %170 {strides = array<i32>} : memref<8x32xf32, #tpu.memory_space<vmem>>, vector<8x32xf32>,
    return
  }
  func.func @transform_0(%arg0: i32, %arg1: i32) -> (i32, i32) {
    %c0_i32 = arith.constant 0 : i32
    %c0_i32_0 = arith.constant 0 : i32
    return %arg0, %c0_i32 : i32, i32
  }
  func.func @transform_1(%arg0: i32, %arg1: i32) -> (i32, i32) {
    %c0_i32 = arith.constant 0 : i32
    %c0_i32_0 = arith.constant 0 : i32
    %c0_i32_1 = arith.constant 0 : i32
    return %c0_i32, %c0_i32_0 : i32, i32
  }
  func.func @transform_2(%arg0: i32, %arg1: i32) -> (i32, i32, i32) {
    %c0_i32 = arith.constant 0 : i32
    %c0_i32_0 = arith.constant 0 : i32
    %c0_i32_1 = arith.constant 0 : i32
    return %arg1, %c0_i32, %c0_i32_0 : i32, i32, i32
  }
  func.func @transform_3(%arg0: i32, %arg1: i32) -> (i32, i32, i32) {
    %c0_i32 = arith.constant 0 : i32
    %c0_i32_0 = arith.constant 0 : i32
    %c0_i32_1 = arith.constant 0 : i32
    return %arg1, %c0_i32, %c0_i32_0 : i32, i32, i32
  }
  func.func @transform_4(%arg0: i32, %arg1: i32) -> (i32, i32, i32) {
    %c0_i32 = arith.constant 0 : i32
    %c0_i32_0 = arith.constant 0 : i32
    %c0_i32_1 = arith.constant 0 : i32
    return %arg1, %c0_i32, %c0_i32_0 : i32, i32, i32
  }
  func.func @transform_5(%arg0: i32, %arg1: i32) -> (i32, i32, i32) {
    %c0_i32 = arith.constant 0 : i32
    %c0_i32_0 = arith.constant 0 : i32
    %c0_i32_1 = arith.constant 0 : i32
    return %arg1, %c0_i32, %c0_i32_0 : i32, i32, i32
  }
  func.func @transform_6(%arg0: i32, %arg1: i32) -> (i32, i32, i32) {
    %c0_i32 = arith.constant 0 : i32
    %c0_i32_0 = arith.constant 0 : i32
    %c0_i32_1 = arith.constant 0 : i32
    return %arg1, %c0_i32, %c0_i32_0 : i32, i32, i32
  }
  func.func @transform_7(%arg0: i32, %arg1: i32) -> (i32, i32, i32) {
    %c0_i32 = arith.constant 0 : i32
    %c0_i32_0 = arith.constant 0 : i32
    %c0_i32_1 = arith.constant 0 : i32
    return %arg1, %c0_i32, %c0_i32_0 : i32, i32, i32
  }
  func.func @transform_8(%arg0: i32, %arg1: i32) -> (i32, i32, i32) {
    %c0_i32 = arith.constant 0 : i32
    %c0_i32_0 = arith.constant 0 : i32
    %c0_i32_1 = arith.constant 0 : i32
    return %arg1, %c0_i32, %c0_i32_0 : i32, i32, i32
  }
  func.func @transform_9(%arg0: i32, %arg1: i32) -> (i32, i32, i32) {
    %c0_i32 = arith.constant 0 : i32
    %c0_i32_0 = arith.constant 0 : i32
    %c0_i32_1 = arith.constant 0 : i32
    return %arg1, %c0_i32, %c0_i32_0 : i32, i32, i32
  }
  func.func @transform_10(%arg0: i32, %arg1: i32) -> (i32, i32, i32) {
    %c0_i32 = arith.constant 0 : i32
    %c0_i32_0 = arith.constant 0 : i32
    %c0_i32_1 = arith.constant 0 : i32
    return %arg1, %c0_i32, %c0_i32_0 : i32, i32, i32
  }
  func.func @transform_11(%arg0: i32, %arg1: i32) -> (i32, i32, i32) {
    %c0_i32 = arith.constant 0 : i32
    %c0_i32_0 = arith.constant 0 : i32
    %c0_i32_1 = arith.constant 0 : i32
    return %arg1, %c0_i32, %c0_i32_0 : i32, i32, i32
  }
  func.func @transform_12(%arg0: i32, %arg1: i32) -> (i32, i32, i32) {
    %c0_i32 = arith.constant 0 : i32
    %c0_i32_0 = arith.constant 0 : i32
    %c0_i32_1 = arith.constant 0 : i32
    return %arg1, %c0_i32, %c0_i32_0 : i32, i32, i32
  }
  func.func @transform_13(%arg0: i32, %arg1: i32) -> (i32, i32, i32) {
    %c0_i32 = arith.constant 0 : i32
    %c0_i32_0 = arith.constant 0 : i32
    %c0_i32_1 = arith.constant 0 : i32
    return %arg1, %c0_i32, %c0_i32_0 : i32, i32, i32
  }
  func.func @transform_14(%arg0: i32, %arg1: i32) -> (i32, i32) {
    %c0_i32 = arith.constant 0 : i32
    %c0_i32_0 = arith.constant 0 : i32
    return %arg0, %c0_i32 : i32, i32
  }
}

</mosaic_0001>

<bundles_post_ra>
// kernel: tpu_custom_call.1
= control target key start
LH: loop header
LB: loop body
LE: loop exit
PB: predicated region body
PF: predicated region fallthrough
CT: control target
= control target key end

     0   :  { %6 = vsyncpa [#allocation3], 0  ;;  %s125_s0 = inlined_call_operand.hbm [shape: f32[8,128], index: 0, kind: input, shape index: {}]   ;;  %s126_s1 = inlined_call_operand.hbm [shape: f32[8,128], index: 1, kind: output, shape index: {}]  }
   0x1   :  { %7 = vsyncpa [#allocation4], 0  ;;  %s89_s6 = smov [#allocation2]   ;;  %s41_s10 = scalar_lea.hbm %s125_s0, 128 }
   0x2   :  { %s14_s7 = sshll.u32 %s89_s6, 4  ;;  %p42_p0 = scmp.ne.s32.totalorder %s125_s0, %s41_s10  ;;  %s15_s7 = int_to_ptr.vmem [resolvable:$true] %s14_s7 }
   0x3   :  { %p45_p1 = scmp.lt.u32.totalorder %s41_s10, %s125_s0 }
   0x5   :  { %p47_p2 = pnand %p45_p1, %p42_p0 }
   0x7   :  { %50 = shalt.err (!%p47_p2)
}
   0x8   :  { %s51_s15 = scalar_lea.vmem %s15_s7, 128  ;;  %p56_p4 = scmp.lt.s32.totalorder %s15_s7, %s15_s7 }
   0x9   :  { %p52_p3 = scmp.ne.s32.totalorder %s15_s7, %s51_s15  ;;  %p57_p5 = scmp.lt.s32.totalorder %s51_s15, %s51_s15 }
   0xb   :  { %p58_p6 = por %p57_p5, %p56_p4 }
   0xd   :  { %p59_p7 = pnand %p58_p6, %p52_p3 }
   0xf   :  { %62 = shalt.err (!%p59_p7)
}
  0x10   :  { %17 = dma.hbm_to_vmem [thread:$0]  %s125_s0, 128, %s15_s7, [#allocation3]  }
  0x11   :  { %85 = dma.done.wait [#allocation3], 128  }
  0x12   :  { %86 = vsyncadd [#allocation3], 4294967168  ;;  %s90_s18 = smov [#allocation5]   ;;  %v21_v0 = vld [vmem:[#allocation2] sm:$0xff] }
  0x13   :  { %s30_s19 = sshll.u32 %s90_s18, 4  ;;  %v22_v1 = vrot.slane %v21_v0, 7  ;;  %s31_s19 = int_to_ptr.vmem [resolvable:$true] %s30_s19 }
  0x14   :  { %s63_s20 = scalar_lea.vmem %s31_s19, 128  ;;  %p68_p9 = scmp.lt.s32.totalorder %s31_s19, %s31_s19 }
  0x15   :  { %23 = vst [vmem:[#allocation5] sm:$0xff] %v22_v1  ;;  %p64_p8 = scmp.ne.s32.totalorder %s31_s19, %s63_s20  ;;  %p69_p10 = scmp.lt.s32.totalorder %s63_s20, %s63_s20 }
  0x17   :  { %p70_p11 = por %p69_p10, %p68_p9 }
  0x19   :  { %p71_p12 = pnand %p70_p11, %p64_p8 }
  0x1b   :  { %74 = shalt.err (!%p71_p12)
}
  0x1c   :  { %s75_s23 = scalar_lea.hbm %s126_s1, 128 }
  0x1d   :  { %p76_p13 = scmp.ne.s32.totalorder %s126_s1, %s75_s23  ;;  %p79_p0 = scmp.lt.u32.totalorder %s75_s23, %s126_s1 }
  0x1f   :  { %p81_p1 = pnand %p79_p0, %p76_p13 }
  0x21   :  { %84 = shalt.err (!%p81_p1)
}
  0x22   :  { %33 = dma.vmem_to_hbm [thread:$0]  %s31_s19, 128, %s126_s1, [#allocation4]  }
  0x23   :  { %87 = dma.done.wait [#allocation4], 128  }
  0x24   :  { %88 = vsyncadd [#allocation4], 4294967168 }
  0x25   :  { %37 = vsyncpa [#allocation3], 1 }
  0x26   :  { %38 = vsyncpa [#allocation4], 1 }

// kernel: tpu_custom_call.1
= control target key start
LH: loop header
LB: loop body
LE: loop exit
PB: predicated region body
PF: predicated region fallthrough
CT: control target
= control target key end

     0   :  { %s2232_s0 = inlined_call_operand.vmem [shape: f32[16,32], index: 0, kind: input, shape index: {}]   ;;  %s2233_s1 = inlined_call_operand.vmem [shape: bf16[32,32], index: 1, kind: input, shape index: {}]   ;;  %s2234_s2 = inlined_call_operand.vmem [shape: bf16[2,32,96], index: 2, kind: input, shape index: {}]   ;;  %s2235_s3 = inlined_call_operand.vmem [shape: f32[2,1,96], index: 3, kind: input, shape index: {}]   ;;  %s2236_s4 = inlined_call_operand.vmem [shape: bf16[2,32,32], index: 4, kind: input, shape index: {}]   ;;  %s2237_s5 = inlined_call_operand.vmem [shape: f32[2,1,32], index: 5, kind: input, shape index: {}]   ;;  %s2238_s6 = inlined_call_operand.vmem [shape: f32[2,1,32], index: 6, kind: input, shape index: {}]   ;;  %s2239_s7 = inlined_call_operand.vmem [shape: f32[2,1,32], index: 7, kind: input, shape index: {}]   ;;  %s2240_s8 = inlined_call_operand.vmem [shape: f32[2,1,32], index: 8, kind: input, shape index: {}]   ;;  %s2241_s9 = inlined_call_operand.vmem [shape: f32[2,1,32], index: 9, kind: input, shape index: {}]   ;;  %s2242_s10 = inlined_call_operand.vmem [shape: bf16[2,32,128], index: 10, kind: input, shape index: {}]   ;;  %s2243_s11 = inlined_call_operand.vmem [shape: f32[2,1,128], index: 11, kind: input, shape index: {}]   ;;  %s2244_s12 = inlined_call_operand.vmem [shape: bf16[2,128,32], index: 12, kind: input, shape index: {}]   ;;  %s2245_s13 = inlined_call_operand.vmem [shape: f32[2,1,32], index: 13, kind: input, shape index: {}]   ;;  %s2246_s14 = inlined_call_operand.hbm [shape: f32[16,32], index: 14, kind: output, shape index: {}]  }
   0x1   :  { %2265 = sst [smem:[#allocation20_spill]] %s2232_s0 }
   0x2   :  { %2266 = sst [smem:[#allocation21_spill]] %s2233_s1 }
   0x3   :  { %2267 = sst [smem:[#allocation22_spill]] %s2234_s2 }
   0x4   :  { %2268 = sst [smem:[#allocation23_spill]] %s2236_s4 }
   0x5   :  { %2269 = sst [smem:[#allocation24_spill]] %s2246_s14 }
   0x6   :  { %19 = vsyncpa [#allocation3], 0 }
   0x7   :  { %21 = vsyncpa [#allocation3 + $0x1], 0  ;;  %s1912_s29 = smov 0   ;;  %s1914_s30 = smov 0  }
   0x8   :  { %s1916_s15 = smov 0   ;;  %s1918_s16 = smov 0  }
   0x9   :  { %s1920_s17 = smov 0   ;;  %s1922_s18 = smov 0  }
   0xa   :  { %s1924_s19 = smov 0   ;;  %s1926_s20 = smov 0  }
   0xb LB: > { %2270 = sst [smem:[#allocation5_spill]] %s1802_s29  ;;  %s1482_s21 = sadd.s32 4294967295, %s1830_s20   ;;  %s1830_s20 = sphi %s1926_s20, %s27_s20   ;;  %s1826_s19 = sphi %s1924_s19, %s2314_s19   ;;  %s1822_s18 = sphi %s1922_s18, %s2313_s18   ;;  %s1818_s17 = sphi %s1920_s17, %s2312_s17   ;;  %s1814_s16 = sphi %s1918_s16, %s2311_s16   ;;  %s1810_s15 = sphi %s1916_s15, %s2310_s15   ;;  %s1806_s30 = sphi %s1914_s30, %s2309_s30   ;;  %s1802_s29 = sphi %s1912_s29, %s2308_s29  }
   0xc   : > { %2271 = sst [smem:[#allocation6_spill]] %s1806_s30  ;;  %s1483_s22 = sadd.s32 4294967294, %s1830_s20  }
   0xd   : > { %2272 = sst [smem:[#allocation7_spill]] %s1810_s15  ;;  %s36_s23 = sadd.s32 1, %s1822_s18 }
   0xe   : > { %2273 = sst [smem:[#allocation8_spill]] %s1814_s16  ;;  %p37_p0 = scmp.ge.s32.totalorder %s36_s23, 2 }
   0xf   : > { %2274 = sst [smem:[#allocation9_spill]] %s1818_s17  ;;  %s39_s24 = sadd.s32 1, %s1826_s19 }
  0x10   : > { %2275 = sst [smem:[#allocation10_spill]] %s1822_s18  ;;  %p415_p1 = scmp.ne.s32.totalorder %s1810_s15, %s1806_s30 }
  0x11   : > { %2276 = sst [smem:[#allocation11_spill]] %s1826_s19  ;;  %p416_p2 = scmp.eq.s32.totalorder %s1482_s21, 3 }
  0x12   : > { %2277 = sst [smem:[#allocation12_spill]] %s1830_s20  ;;  %s2316_s23 = smov (%p37_p0, %s36_s23), 0 }
  0x13   : > { %2278 = sst [smem:[#allocation13_spill]] %s2316_s23  ;;  %s2318_s24 = smov (!%p37_p0, %s39_s24), %s1826_s19 }
  0x14   : > { %p1961_p3 = por %p416_p2, %p415_p1  ;;  %p421_p4 = scmp.ne.s32.totalorder %s1806_s30, %s1802_s29 }
  0x15   : > { %p41_p5 = scmp.ge.s32.totalorder %s2318_s24, 2  ;;  %p422_p6 = scmp.eq.s32.totalorder %s1483_s22, 3 }
  0x16   : > { %s2279_s25 = scalar_select %p1961_p3, 1, 0 }
  0x17   : > { %p1486_p7 = scmp.ge.s32.totalorder %s1830_s20, 1  ;;  %p530_p8 = scmp.lt.s32.totalorder %s1830_s20, 5 }
  0x18   : > { %2280 = sst [smem:[#allocation14_spill]] %s2279_s25  ;;  %s2320_s24 = smov (%p41_p5, %s2318_s24), 0 }
  0x19   : > { %2281 = sst [smem:[#allocation15_spill]] %s2320_s24  ;;  %p1971_p9 = por %p422_p6, %p421_p4 }
  0x1a   : > { %p531_p10 = pnand %p1486_p7, %p530_p8  ;;  %s402_s27 = ssub.s32 %s1826_s19, %s2320_s24 }
  0x1b   : > { %s2282_s26 = scalar_select %p1971_p9, 1, 0 }
  0x1c   : > { %s405_s28 = sadd.s32 1, %s1810_s15  ;;  %p403_p11 = scmp.eq.s32.totalorder %s402_s27, 0 }
  0x1d   : > { %2283 = sst [smem:[#allocation16_spill]] %s2282_s26  ;;  %534 = sbr.rel (%p531_p10) target bundleno = 1971 (0x7b3), region = 76 }
  0x1e   : > { %s1979_s21 = scalar_select %p403_p11, %s1810_s15, %s405_s28  }
  0x20   : > { %2284 = sst [smem:[#allocation17_spill]] %s1979_s21 }
  0x24   : > { %s2251_s22 = sand.u32 1, %s1806_s30   ;;  %p619_p12 = scmp.lt.s32.totalorder %s1818_s17, 1 }
  0x25   : > { %s1487_s23 = sshll.u32 %s2251_s22, 3  ;;  %p623_p13 = scmp.lt.s32.totalorder %s1814_s16, 1 }
  0x26   : > { %s620_s18 = scalar_select %p619_p12, %s1818_s17, 1 }
  0x27   : > { %s1988_s26 = scalar_select %p623_p13, %s1814_s16, 1 }
  0x28   : > { %s1488_s27 = sshll.u32 %s620_s18, 3  ;;  %s2285_s0 = sld [smem:[#allocation20_spill]] }
  0x29   : > { %s1532_s22 = sshll.u32 %s1988_s26, 4  ;;  %s2286_s2 = sld [smem:[#allocation22_spill]] }
  0x2a   : > { %s2288_s4 = sld [smem:[#allocation23_spill]]  ;;  %s650_s17 = scalar_lea.vmem %s2241_s9, %s1988_s26 }
  0x2b   : > { %s2031_s16 = scalar_lea.vmem %s2242_s10, %s1532_s22  ;;  %s658_s28 = scalar_lea.vmem %s2243_s11, %s1988_s26 }
  0x2c   : > { %s1535_s24 = sshll.u32 %s1988_s26, 6  ;;  %s2047_s25 = scalar_lea.vmem [#allocation2], %s1487_s23 }
  0x2d   : > { %s2045_s20 = scalar_lea.vmem %s2244_s12, %s1535_s24  ;;  %s2290_s30 = sld [smem:[#allocation8_spill]] }
  0x2e   : > { %s622_s19 = scalar_lea.vmem %s2285_s0, %s1488_s27  ;;  %s641_s0 = scalar_lea.vmem %s2238_s6, %s1988_s26 }
  0x2f   : > { %s1997_s29 = scalar_lea.vmem %s2286_s2, %s1532_s22  ;;  %s666_s2 = scalar_lea.vmem %s2245_s13, %s1988_s26 }
  0x30   : > { %2287 = sst [smem:[#allocation18_spill]] %s1997_s29  ;;  %s2006_s1 = scalar_lea.vmem %s2288_s4, %s1532_s22 }
  0x31   : > { %2289 = sst [smem:[#allocation19_spill]] %s2006_s1 }
  0x33   : > { %p1497_p0 = scmp.ne.s32.totalorder %s2290_s30, 0 }
  0x34   : > { %v672_v0 = vld [vmem:[%s622_s19] sm:$0xff] (!%p1497_p0)  ;;  %vm673_vm0 = vcmask (!%p1497_p0), 261120  }
  0x35   : > { %671 = sbr.rel (%p1497_p0) target bundleno = 60 (0x3c), region = 80  ;;  %674 = vst.msk [vmem:[%s2047_s25] sm:$0xff] (!%p1497_p0), %vm673_vm0, %v672_v0 }
  0x3c PF: > { %s2291_s1 = sld [smem:[#allocation18_spill]]  ;;  %v2052_v1 = vld [vmem:[%s2047_s25] sm:$0xff]  ;;  %vm678_vm1 = vcmask 261120   ;;  %v1832_v9 = vmov 0.0   ;;  %vm1833_vm2 = vmmov 0   ;;  %s2292_s24 = scalar_lea.vmem %s2239_s7, %s1988_s26  ;;  %vm780_vm3 = vcmask 1040384  }
  0x3d   : > { %v679_v2 = vsel %vm678_vm1, %v2052_v1, 0.0  ;;  %1563 = vmatprep.subr.bf16.mxu1 %v1832_v9  ;;  %1567 = vmatprep.mubr.msk.bf16.mxu1 %vm1833_vm2, %v1832_v9  ;;  %v1498_v15 = vld [vmem:[%s641_s0] ss:$0 sm:$0xff]  ;;  %s2293_s15 = sld [smem:[#allocation21_spill]]  ;;  %s1834_s4 = smov 96   ;;  %vm786_vm4 = vcmask 1041408   ;;  %v950_v48 = vlaneseq }
  0x3e   : > { %680 = vadd.xlane.f32.xlu0 %v679_v2  ;;  %1595 = vmatprep.subr.bf16.mxu0 %v1832_v9  ;;  %v1499_v17 = vld [vmem:[%s2292_s24] ss:$0 sm:$0xff]  ;;  %s1835_s19 = smov 64   ;;  %s2296_s23 = sld [smem:[#allocation19_spill]] }
  0x3f   : > { %1599 = vmatprep.mubr.msk.bf16.mxu0 %vm1833_vm2, %v1832_v9  ;;  %v951_v50 = vshrl.u32 %v950_v48, 7  ;;  %s2297_s18 = scalar_lea.vmem %s2237_s5, %s1988_s26  ;;  %s2299_s30 = sld [smem:[#allocation9_spill]] }
  0x40   : > { %s1836_s0 = smov [#allocation2]  }
  0x41   : > { %v956_v53 = vand.u32 7, %v951_v50  ;;  %s1740_s29 = sshll.u32 %s1836_s0, 4  ;;  %s1741_s29 = int_to_ptr.vmem [resolvable:$false] %s1740_s29 }
  0x42   : > { %v1706_v8 = vld [vmem:[%s2291_s1] sm:$0xff]   ;;  %v1707_v10 = vld [vmem:[%s2291_s1 + $0x8] sm:$0xff]   ;;  %s2295_s1 = scalar_lea.vmem %s2235_s3, %s1988_s26 }
  0x43   : > { %1564 = vmatpush3.bf16.msra.mxu1 %v1706_v8  ;;  %s2294_s21 = smov %s2293_s15  ;;  %v1708_v21 = vld [vmem:[%s2293_s15] sm:$0xff]   ;;  %vm964_vm5 = vcmp.ge.s32.totalorder %v956_v53, 1  ;;  %vm968_vm6 = vcmp.ge.s32.totalorder %v956_v53, 2  ;;  %s2298_s15 = scalar_lea.vmem %s2240_s8, %s1988_s26  ;;  %v1717_v53 = vld [vmem:[%s2045_s20 + $0x18] sm:$0xff]  }
  0x44   : > { %1565 = vmatprep.subr.bf16.mxu1 %v1832_v9  ;;  %v1709_v22 = vld [vmem:[%s2294_s21 + $0x8] sm:$0xff]   ;;  %v1500_v23 = vld [vmem:[%s2295_s1] ss:$0 sm:$0xff] }
  0x45   : > { %v1710_v43 = vld [vmem:[%s2296_s23] sm:$0xff]   ;;  %v1711_v44 = vld [vmem:[%s2296_s23 + $0x8] sm:$0xff]   ;;  %s1292_s23 = sshll.u32 %s2047_s25, 4  ;;  %s2177_s23 = int_to_ptr.vmem [resolvable:$true] %s1292_s23 }
  0x46   : > { %1596 = vmatpush3.bf16.msra.mxu0 %v1710_v43  ;;  %p1743_p5 = scmp.lt.s32.totalorder %s2177_s23, %s1741_s29 }
  0x47   : > { %1566 = vmatpush3.bf16.msra.mxu1 %v1707_v10  ;;  %1597 = vmatprep.subr.bf16.mxu0 %v1832_v9 }
  0x48   : > { %1571 = vmatprep.subr.bf16.mxu1 %v1832_v9 }
  0x4a   : > { %1598 = vmatpush3.bf16.msra.mxu0 %v1711_v44 }
  0x4b   : > { %1611 = vmatprep.subr.bf16.mxu0 %v1832_v9 }
  0xcb   : > { %v681_v3 = vpop.xlane.xlu0 %680 }
  0xcc   : > { %v683_v4 = vmul.f32 0.03125, %v681_v3 }
  0xce   : > { %v684_v5 = vsub.f32 %v2052_v1, %v683_v4 }
  0xd0   : > { %v685_v6 = vmul.f32 %v684_v5, %v684_v5 }
  0xd2   : > { %v686_v7 = vsel %vm678_vm1, %v685_v6, 0.0 }
  0xd3   : > { %687 = vadd.xlane.f32.xlu0 %v686_v7 }
 0x160   : > { %v688_v11 = vpop.xlane.xlu0 %687 }
 0x161   : > { %v689_v12 = vmul.f32 0.03125, %v688_v11 }
 0x163   : > { %v690_v13 = vadd.f32 1e-05, %v689_v12 }
 0x165   : > { %1722 = vrsqrt.f32 %v690_v13 }
 0x16f   : > { %v1723_v14 = vpop.eup %1722 }
 0x170   : > { %v692_v16 = vmul.f32 %v1723_v14, %v684_v5 }
 0x172   : > { %v699_v18 = vmul.f32 %v1498_v15, %v692_v16 }
 0x174   : > { %v706_v19 = vadd.f32 %v1499_v17, %v699_v18 }
 0x176   : > { %v707_v20 = vpack.c.bf16 %v706_v19, %v706_v19 }
 0x178   : > { %1568 = vmatmul.mubr.msk.bf16.vlgmr.msra.gmra.mrb[0].mxu1 %vm678_vm1, %v707_v20 }
 0x179   : > { %1575 = vmatprep.mubr.msk.bf16.mxu1 %vm1833_vm2, %v1832_v9  ;;  %1572 = vmatpush3.bf16.msra.mxu1 %v1708_v21 }
 0x17a   : > { %1573 = vmatprep.subr.bf16.mxu1 %v1832_v9 }
 0x17d   : > { %1574 = vmatpush3.bf16.msra.mxu1 %v1709_v22 }
 0x17e   : > { %1579 = vmatprep.subr.bf16.mxu1 %v1832_v9 }
 0x24b   : > { %v768_v24 = vpop.f32.mrb[0].mxu1 }
 0x24c   : > { %v769_v25 = vadd.f32 %v1500_v23, %v768_v24  ;;  %v1569_v26 = vpop.f32.mrb[1].mxu1 }
 0x24d   : > { %v771_v27 = vpop.f32.mrb[2].mxu1  ;;  %v1509_v26 = vld [vmem:[%s2297_s18] ss:$0 sm:$0xff]  ;;  %s2302_s18 = sld [smem:[#allocation24_spill]] }
 0x24e   : > { %800 = vrot.lane.b32.xlu1 %v769_v25, %s1834_s4  ;;  %v1570_v28 = vpop.f32.mrb[3].mxu1  ;;  %v782_v29 = vrot.slane %v769_v25, 6  ;;  %v776_v30 = vrot.slane %v769_v25, 7  ;;  %v774_v31 = vmul.f32 0.35355338, %v769_v25 }
 0x250   : > { %783 = vrot.lane.b32.xlu0 %v782_v29, %s1834_s4 }
 0x252   : > { %777 = vrot.lane.b32.xlu1 %v776_v30, %s1834_s4 }
 0x253   : > { %s2303_s27 = smov %s2302_s18 }
 0x256   : > { %986 = vrot.lane.b32.xlu1 %v769_v25, %s1835_s19 }
 0x25a   : > { %788 = vrot.lane.b32.xlu1 %v776_v30, %s1835_s19 }
 0x25e   : > { %792 = vrot.lane.b32.xlu1 %v782_v29, %s1835_s19  ;;  %s1529_s19 = sshll.u32 %s2299_s30, 7 }
 0x2c0   : > { %v801_v32 = vpop.permute.xlu1 %800 }
 0x2c1   : > { %v803_v33 = vmul.f32 %v801_v32, %v774_v31 }
 0x2c2   : > { %v784_v38 = vpop.permute.xlu0 %783 }
 0x2c3   : > { %v804_v34 = vpack.c.bf16 %v803_v33, %v803_v33  ;;  %v787_v40 = vsel %vm786_vm4, 0.0, %v784_v38 }
 0x2c4   : > { %v778_v35 = vpop.permute.xlu1 %777  ;;  %v905_v41 = vmul.f32 %v787_v40, %v774_v31  ;;  %v1713_v40 = vld [vmem:[%s2031_s16 + $0x8] sm:$0xff]  }
 0x2c5   : > { %v781_v36 = vsel %vm780_vm3, 0.0, %v778_v35  ;;  %1576 = vmatmul.mubr.msk.bf16.vlgmr.msra.gmra.mrb[4].mxu1 %vm678_vm1, %v804_v34 }
 0x2c6   : > { %1580 = vmatpush3.bf16.msra.mxu1 %v1708_v21  ;;  %1583 = vmatprep.mubr.msk.bf16.mxu1 %vm1833_vm2, %v1832_v9  ;;  %v860_v37 = vmul.f32 %v781_v36, %v774_v31  ;;  %v906_v42 = vpack.c.bf16 %v905_v41, %v905_v41  ;;  %v1715_v41 = vld [vmem:[%s2045_s20 + $0x8] sm:$0xff]  }
 0x2c7   : > { %1581 = vmatprep.subr.bf16.mxu1 %v1832_v9 }
 0x2c8   : > { %v861_v39 = vpack.c.bf16 %v860_v37, %v860_v37  ;;  %v987_v4 = vpop.permute.xlu1 %986 }
 0x2ca   : > { %1582 = vmatpush3.bf16.msra.mxu1 %v1709_v22 }
 0x2cb   : > { %1587 = vmatprep.subr.bf16.mxu1 %v1832_v9 }
 0x2cc   : > { %v789_v8 = vpop.permute.xlu1 %788 }
 0x2cd   : > { %1584 = vmatmul.mubr.msk.bf16.vlgmr.msra.gmra.mrb[8].mxu1 %vm678_vm1, %v861_v39  ;;  %v791_v13 = vsel %vm780_vm3, 0.0, %v789_v8  ;;  %v1712_v39 = vld [vmem:[%s2031_s16] sm:$0xff]   ;;  %s2175_s16 = scalar_lea.hbm %s2302_s18, %s1529_s19 }
 0x2ce   : > { %1588 = vmatpush3.bf16.msra.mxu1 %v1708_v21  ;;  %1591 = vmatprep.mubr.msk.bf16.mxu1 %vm1833_vm2, %v1832_v9 }
 0x2cf   : > { %1589 = vmatprep.subr.bf16.mxu1 %v1832_v9 }
 0x2d0   : > { %v793_v10 = vpop.permute.xlu1 %792 }
 0x2d1   : > { %v795_v16 = vsel %vm786_vm4, 0.0, %v793_v10 }
 0x2d2   : > { %1590 = vmatpush3.bf16.msra.mxu1 %v1709_v22 }
 0x2d3   : > { %1603 = vmatprep.subr.bf16.mxu1 %v1832_v9 }
 0x2d5   : > { %1592 = vmatmul.mubr.msk.bf16.vlgmr.msra.gmra.mrb[12].mxu1 %vm678_vm1, %v906_v42  ;;  %v1716_v42 = vld [vmem:[%s2045_s20 + $0x10] sm:$0xff]  }
 0x2d6   : > { %1607 = vmatprep.mubr.msk.bf16.mxu1 %vm1833_vm2, %v1832_v9  ;;  %1604 = vmatpush3.bf16.msra.mxu1 %v1712_v39 }
 0x2d7   : > { %1605 = vmatprep.subr.bf16.mxu1 %v1832_v9 }
 0x2da   : > { %1606 = vmatpush3.bf16.msra.mxu1 %v1713_v40 }
 0x398   : > { %v854_v45 = vpop.f32.mrb[4].mxu1 }
 0x399   : > { %v1577_v46 = vpop.f32.mrb[5].mxu1 }
 0x39a   : > { %v857_v47 = vpop.f32.mrb[6].mxu1 }
 0x39b   : > { %v1578_v49 = vpop.f32.mrb[7].mxu1  ;;  %v1513_v47 = vld [vmem:[%s2298_s15] ss:$0 sm:$0xff]  ;;  %s1736_s15 = scalar_lea.vmem %s2177_s23, 128 }
 0x39c   : > { %v1514_v49 = vld [vmem:[%s650_s17] ss:$0 sm:$0xff]  ;;  %p1737_p1 = scmp.ne.s32.totalorder %s2177_s23, %s1736_s15  ;;  %s1742_s17 = scalar_lea.vmem %s1741_s29, 256 }
 0x39d   : > { %p1744_p6 = scmp.lt.s32.totalorder %s1742_s17, %s1736_s15 }
 0x39e   : > { %p1738_p2 = pnand %p1737_p1, %p1961_p3 }
 0x39f   : > { %p1745_p7 = por %p1744_p6, %p1743_p5 }
 0x3a0   : > { %v899_v51 = vpop.f32.mrb[8].mxu1  ;;  %p1739_p4 = pneg %p1738_p2 }
 0x3a1   : > { %v1585_v52 = vpop.f32.mrb[9].mxu1  ;;  %v967_v57 = vsel %vm964_vm5, %v899_v51, -1e+30 }
 0x3a2   : > { %v902_v54 = vpop.f32.mrb[10].mxu1  ;;  %p1746_p8 = pnand %p1745_p7, %p1739_p4 }
 0x3a3   : > { %v1586_v55 = vpop.f32.mrb[11].mxu1  ;;  %v1718_v54 = vld [vmem:[%s2045_s20 + $0x20] sm:$0xff]  }
 0x3a4   : > { %v1719_v55 = vld [vmem:[%s2045_s20 + $0x28] sm:$0xff]  }
 0x3a8   : > { %v944_v56 = vpop.f32.mrb[12].mxu1 }
 0x3a9   : > { %v971_v58 = vsel %vm968_vm6, %v944_v56, -1e+30  ;;  %v1593_v59 = vpop.f32.mrb[13].mxu1  ;;  %v1720_v56 = vld [vmem:[%s2045_s20 + $0x30] sm:$0xff]  }
 0x3aa   : > { %v972_v60 = vmax.f32 %v967_v57, %v971_v58  ;;  %v947_v61 = vpop.f32.mrb[14].mxu1 }
 0x3ab   : > { %v1594_v62 = vpop.f32.mrb[15].mxu1 }
 0x3ac   : > { %v973_v63 = vmax.f32 %v854_v45, %v972_v60 }
 0x3ae   : > { %v974_v0 = vsub.f32 %v854_v45, %v973_v63  ;;  %v977_v2 = vsub.f32 %v967_v57, %v973_v63  ;;  %v980_v3 = vsub.f32 %v971_v58, %v973_v63  ;;  %v1721_v57 = vld [vmem:[%s2045_s20 + $0x38] sm:$0xff]   ;;  %v1515_v58 = vld [vmem:[%s658_s28] ss:$0 sm:$0xff] }
 0x3b0   : > { %v975_v5 = vmul.f32 1.442695, %v974_v0  ;;  %v978_v6 = vmul.f32 1.442695, %v977_v2  ;;  %v981_v7 = vmul.f32 1.442695, %v980_v3 }
 0x3b2   : > { %1724 = vpow2.f32 %v975_v5 }
 0x3b3   : > { %1726 = vpow2.f32 %v978_v6  ;;  %v1519_v6 = vld [vmem:[%s666_s2] ss:$0 sm:$0xff] }
 0x3b4   : > { %1728 = vpow2.f32 %v981_v7 }
 0x3bc   : > { %v1725_v11 = vpop.eup %1724 }
 0x3bd   : > { %v1727_v12 = vpop.eup %1726  ;;  %v989_v14 = vmul.f32 %v1725_v11, %v987_v4 }
 0x3be   : > { %v1729_v15 = vpop.eup %1728  ;;  %v983_v17 = vadd.f32 %v1727_v12, %v1725_v11  ;;  %v990_v18 = vmul.f32 %v1727_v12, %v791_v13 }
 0x3bf   : > { %v992_v19 = vmul.f32 %v1729_v15, %v795_v16 }
 0x3c0   : > { %v984_v20 = vadd.f32 %v1729_v15, %v983_v17  ;;  %v991_v21 = vadd.f32 %v990_v18, %v989_v14 }
 0x3c2   : > { %1730 = vrcp.f32 %v984_v20  ;;  %v993_v22 = vadd.f32 %v992_v19, %v991_v21 }
 0x3cc   : > { %v1731_v23 = vpop.eup %1730 }
 0x3cd   : > { %v994_v24 = vmul.f32 %v1731_v23, %v993_v22 }
 0x3cf   : > { %v995_v25 = vpack.c.bf16 %v994_v24, %v994_v24 }
 0x3d1   : > { %1600 = vmatmul.mubr.msk.bf16.vlgmr.msra.gmra.mrb[0].mxu0 %vm678_vm1, %v995_v25 }
 0x3d2   : > { %1627 = vmatprep.mubr.msk.bf16.mxu0 %vm1833_vm2, %v1832_v9 }
 0x4a4   : > { %v1056_v27 = vpop.f32.mrb[0].mxu0 }
 0x4a5   : > { %v1057_v28 = vadd.f32 %v1509_v26, %v1056_v27  ;;  %v1601_v29 = vpop.f32.mrb[1].mxu0 }
 0x4a6   : > { %v1059_v30 = vpop.f32.mrb[2].mxu0 }
 0x4a7   : > { %v2124_v31 = vadd.f32 %v1057_v28, %v2052_v1  ;;  %v1602_v32 = vpop.f32.mrb[3].mxu0  ;;  %v1714_v1 = vld [vmem:[%s2045_s20] sm:$0xff]   ;;  %s2300_s20 = sld [smem:[#allocation6_spill]] }
 0x4a8   : > { %1612 = vmatpush3.bf16.msra.mxu0 %v1714_v1 }
 0x4a9   : > { %v1065_v33 = vsel %vm678_vm1, %v2124_v31, 0.0  ;;  %1613 = vmatprep.subr.bf16.mxu0 %v1832_v9 }
 0x4aa   : > { %1066 = vadd.xlane.f32.xlu1 %v1065_v33 }
 0x4ac   : > { %1614 = vmatpush3.bf16.msra.mxu0 %v1715_v41 }
 0x4ad   : > { %1615 = vmatprep.subr.bf16.mxu0 %v1832_v9  ;;  %s2304_s2 = sand.u32 1, %s2300_s20  }
 0x4ae   : > { %s1279_s26 = scalar_lea.sflag [#allocation3], %s2304_s2 }
 0x4b0   : > { %1616 = vmatpush3.bf16.msra.mxu0 %v1716_v42 }
 0x4b1   : > { %1617 = vmatprep.subr.bf16.mxu0 %v1832_v9 }
 0x4b4   : > { %1618 = vmatpush3.bf16.msra.mxu0 %v1717_v53 }
 0x4b5   : > { %1619 = vmatprep.subr.bf16.mxu0 %v1832_v9 }
 0x4b8   : > { %1620 = vmatpush3.bf16.msra.mxu0 %v1718_v54 }
 0x4b9   : > { %1621 = vmatprep.subr.bf16.mxu0 %v1832_v9 }
 0x4bc   : > { %1622 = vmatpush3.bf16.msra.mxu0 %v1719_v55 }
 0x4bd   : > { %1623 = vmatprep.subr.bf16.mxu0 %v1832_v9 }
 0x4c0   : > { %1624 = vmatpush3.bf16.msra.mxu0 %v1720_v56 }
 0x4c1   : > { %1625 = vmatprep.subr.bf16.mxu0 %v1832_v9 }
 0x4c4   : > { %1626 = vmatpush3.bf16.msra.mxu0 %v1721_v57 }
 0x537   : > { %v1067_v34 = vpop.xlane.xlu1 %1066 }
 0x538   : > { %v1068_v35 = vmul.f32 0.03125, %v1067_v34 }
 0x53a   : > { %v1069_v36 = vsub.f32 %v2124_v31, %v1068_v35 }
 0x53c   : > { %v1070_v37 = vmul.f32 %v1069_v36, %v1069_v36 }
 0x53e   : > { %v1071_v38 = vsel %vm678_vm1, %v1070_v37, 0.0 }
 0x53f   : > { %1072 = vadd.xlane.f32.xlu0 %v1071_v38 }
 0x5cc   : > { %v1073_v43 = vpop.xlane.xlu0 %1072 }
 0x5cd   : > { %v1074_v44 = vmul.f32 0.03125, %v1073_v43 }
 0x5cf   : > { %v1075_v45 = vadd.f32 1e-05, %v1074_v44 }
 0x5d1   : > { %1732 = vrsqrt.f32 %v1075_v45 }
 0x5db   : > { %v1733_v46 = vpop.eup %1732 }
 0x5dc   : > { %v1077_v48 = vmul.f32 %v1733_v46, %v1069_v36 }
 0x5de   : > { %v1084_v50 = vmul.f32 %v1513_v47, %v1077_v48 }
 0x5e0   : > { %v1091_v51 = vadd.f32 %v1514_v49, %v1084_v50 }
 0x5e2   : > { %v1092_v52 = vpack.c.bf16 %v1091_v51, %v1091_v51 }
 0x5e4   : > { %1608 = vmatmul.mubr.msk.bf16.vlgmr.msra.gmra.mrb[16].mxu1 %vm678_vm1, %v1092_v52 }
 0x6b7   : > { %v1153_v59 = vpop.f32.mrb[16].mxu1 }
 0x6b8   : > { %v1154_v60 = vadd.f32 %v1515_v58, %v1153_v59  ;;  %v1609_v61 = vpop.f32.mrb[17].mxu1 }
 0x6b9   : > { %v1156_v62 = vpop.f32.mrb[18].mxu1 }
 0x6ba   : > { %v1160_v63 = vmul.f32 0.70710677, %v1154_v60  ;;  %v1610_v0 = vpop.f32.mrb[19].mxu1  ;;  %v1159_v3 = vmul.f32 0.5, %v1154_v60 }
 0x6bc   : > { %1734 = verf.f32 %v1160_v63 }
 0x6c6   : > { %v1735_v2 = vpop.eup %1734 }
 0x6c7   : > { %v1162_v9 = vadd.f32 1.0, %v1735_v2 }
 0x6c9   : > { %v1163_v4 = vmul.f32 %v1162_v9, %v1159_v3 }
 0x6cb   : > { %v1164_v5 = vpack.c.bf16 %v1163_v4, %v1163_v4 }
 0x6cd   : > { %1628 = vmatmul.mubr.bf16.vlgmr.msra.gmra.mrb[4].mxu0 %v1164_v5 }
 0x7a0   : > { %v1270_v7 = vpop.f32.mrb[4].mxu0 }
 0x7a1   : > { %v1271_v8 = vadd.f32 %v1519_v6, %v1270_v7  ;;  %v1629_v10 = vpop.f32.mrb[5].mxu0 }
 0x7a2   : > { %v1273_v11 = vpop.f32.mrb[6].mxu0 }
 0x7a3   : > { %v1276_v12 = vadd.f32 %v1271_v8, %v2124_v31  ;;  %v1630_v13 = vpop.f32.mrb[7].mxu0 }
 0x7a5   : > { %1277 = vst.msk [vmem:[%s2047_s25] sm:$0xff] %vm678_vm1, %v1276_v12 }
 0x7a6   : > { %1749 = shalt.err (!%p1746_p8)
}
 0x7a7   : > { %s1750_s25 = scalar_lea.hbm %s2175_s16, 128  ;;  %s1754_s20 = scalar_lea.hbm %s2303_s27, 256 }
 0x7a8   : > { %p1751_p10 = scmp.ne.s32.totalorder %s2175_s16, %s1750_s25  ;;  %p1755_p13 = scmp.lt.u32.totalorder %s2175_s16, %s2303_s27 }
 0x7a9   : > { %p1756_p0 = scmp.lt.u32.totalorder %s1754_s20, %s1750_s25  ;;  %p1758_p2 = scmp.lt.u32.totalorder %s1750_s25, %s2175_s16 }
 0x7aa   : > { %p1752_p11 = pnand %p1751_p10, %p1961_p3 }
 0x7ab   : > { %p1757_p1 = por %p1756_p0, %p1755_p13 }
 0x7ac   : > { %p1753_p12 = pneg %p1752_p11 }
 0x7ad   : > { %p1759_p4 = por %p1758_p2, %p1757_p1 }
 0x7af   : > { %p1760_p5 = pnand %p1759_p4, %p1753_p12 }
 0x7b1   : > { %1763 = shalt.err (!%p1760_p5)
}
 0x7b2   : > { %1631 = dma.vmem_to_hbm [thread:$0]  (%p1961_p3), %s2177_s23, 128, %s2175_s16, %s1279_s26  }
 0x7b3 PF: > { %s2305_s19 = sld [smem:[#allocation12_spill]]  ;;  %s2306_s22 = sld [smem:[#allocation5_spill]] }
 0x7b9   : > { %p1637_p6 = scmp.ge.s32.totalorder %s2305_s19, 2  ;;  %s1304_s18 = sand.u32 1, %s2306_s22  }
 0x7ba   : > { %s1305_s2 = scalar_lea.sflag [#allocation3], %s1304_s18 }
 0x7bb   : > { %p1634_p7 = pnand %p1637_p6, %p1971_p9 }
 0x7bd   : > { %1797 = dma.done.wait (!%p1634_p7), %s1305_s2, 128  }
 0x7be   : > { %1799 = vsyncadd (!%p1634_p7), %s1305_s2, 4294967168  ;;  %s27_s20 = sadd.s32 1, %s2305_s19   ;;  %s2308_s29 = sld [smem:[#allocation6_spill]] }
 0x7bf   : > { %p24_p8 = scmp.ge.s32.totalorder %s27_s20, 6   ;;  %s2309_s30 = sld [smem:[#allocation7_spill]] }
 0x7c0   : > { %s2310_s15 = sld [smem:[#allocation17_spill]]  ;;  %s2311_s16 = sld [smem:[#allocation10_spill]] }
 0x7c1   : > { %s2312_s17 = sld [smem:[#allocation11_spill]]  ;;  %s2313_s18 = sld [smem:[#allocation13_spill]] }
 0x7c2   : > { %s2314_s19 = sld [smem:[#allocation15_spill]]  ;;  %26 = sbr.rel (!%p24_p8) target bundleno = 11 (0xb), region = 151 }
 0x7c9   :  { %1310 = vsyncpa [#allocation3], 1 }
 0x7ca   :  { %1312 = vsyncpa [#allocation3 + $0x1], 1 }

</bundles_post_ra>
